<compile_context>
chip_gen: v7x
topology: tpu7x:2x2x1
jax: 0.10.0
libtpu: 0.0.40
codegen_flags: <defaults>
</compile_context>

<pallas_src>
import functools
import math

import jax
import jax.numpy as jnp
from jax.experimental import pallas as pl
from jax.experimental.pallas import tpu as pltpu


def _round_up(x, m):
    return ((x + m - 1) // m) * m


def _block_diag_repeat(w, f):
    """block_diag(w, w, ..., w) with f copies (f == 1 -> w unchanged)."""
    if f == 1:
        return w
    return jnp.kron(jnp.eye(f, dtype=w.dtype), w)


def _choose_fold(fea, max_fold=8):
    """Pick fold so fold*FeaSize is a multiple of 128 (lane-dense output stores)."""
    if fea % 128 == 0:
        return 1
    f = 128 // math.gcd(fea, 128)
    if f > max_fold:
        # TODO(synk): FeaSize needing fold > max_fold keeps masked vst.msk stores.
        return 1
    # Raise fold a bit further (kernel stays memory-bound, MXU has huge slack) so the
    # folded fc1 K dim is fuller and the input tiles are lane-denser.
    while f < 4 and 2 * f <= max_fold:
        f *= 2
    return f


def mlp_g_kernel(noise_ref, sem_ref, w1n_ref, w1s_ref, b1_ref, w2_ref, b2_ref,
                 out_ref):
    cdt = w1n_ref.dtype
    # fc1 split over the concat axis: cat(noise, sem) @ W1^T == noise@W1n^T + sem@W1s^T.
    # Inputs arrive in f32; cast to bf16 in-kernel (VPU, free) for the MXU.
    h = jnp.dot(noise_ref[...].astype(cdt), w1n_ref[...],
                preferred_element_type=jnp.float32)
    h = h + jnp.dot(sem_ref[...].astype(cdt), w1s_ref[...],
                    preferred_element_type=jnp.float32)
    h = h + b1_ref[...]
    # LeakyReLU(0.2) in f32 on the VPU.
    h = jnp.where(h > 0, h, 0.2 * h)
    # fc2 + ReLU; cast only at the final store (bf16 output by default).
    y = jnp.dot(h.astype(w2_ref.dtype), w2_ref[...],
                preferred_element_type=jnp.float32)
    y = jnp.maximum(y + b2_ref[...], 0.0)
    out_ref[...] = y.astype(out_ref.dtype)


def prepare_mlp_g_params(w1, b1, w2, b2, noise_size, *, compute_dtype=jnp.bfloat16):
    """One-time weight layout prep (hoisted off the per-call path).

    w1: [NGH, NoiseSize+SemSize] (input order matches torch.cat((noise, sem), 1)),
    b1: [NGH], w2: [FeaSize, NGH], b2: [FeaSize].
    """
    ngh, din = w1.shape
    fea = w2.shape[0]
    sem_size = din - noise_size
    fold = _choose_fold(fea)

    w1f = jnp.asarray(w1, jnp.float32)
    w1nt = _block_diag_repeat(w1f[:, :noise_size].T, fold)          # [f*noise, f*ngh]
    w1st = _block_diag_repeat(w1f[:, noise_size:].T, fold)          # [f*sem,   f*ngh]
    w2t = _block_diag_repeat(jnp.asarray(w2, jnp.float32).T, fold)  # [f*ngh,  f*fea]
    b1r = jnp.tile(jnp.asarray(b1, jnp.float32), fold).reshape(1, fold * ngh)
    b2r = jnp.tile(jnp.asarray(b2, jnp.float32), fold).reshape(1, fold * fea)

    return {
        "fold": int(fold),
        "noise_size": int(noise_size),
        "sem_size": int(sem_size),
        "fea": int(fea),
        "w1nt": w1nt.astype(compute_dtype),
        "w1st": w1st.astype(compute_dtype),
        "w2t": w2t.astype(compute_dtype),
        "b1": b1r,
        "b2": b2r,
    }


def mlp_g_forward(noise, sem, params, *, rows_per_tile=2048,
                  out_dtype=jnp.bfloat16):
    """noise: [B, NoiseSize], sem: [B, SemSize] -> [B, FeaSize] in out_dtype."""
    fold = params["fold"]
    fea = params["fea"]
    w1nt, w1st, w2t = params["w1nt"], params["w1st"], params["w2t"]
    b1r, b2r = params["b1"], params["b2"]

    B, nsz = noise.shape
    ssz = sem.shape[1]
    assert nsz == params["noise_size"] and ssz == params["sem_size"]
    assert sem.shape[0] == B

    # Pad the batch only to a multiple of `fold` (usually a no-op) so the folded
    # reshapes below are free, row-major metadata ops. The grid uses partial last
    # blocks, so no padding up to the tile size is needed.
    b_pad = _round_up(B, fold)
    if b_pad != B:
        noise = jnp.pad(noise, ((0, b_pad - B), (0, 0)))
        sem = jnp.pad(sem, ((0, b_pad - B), (0, 0)))
    rows_total = b_pad // fold

    nf = noise.reshape(rows_total, fold * nsz)     # free reshape
    sf = sem.reshape(rows_total, fold * ssz)       # free reshape

    h_cols = w2t.shape[0]                          # fold * NGH
    o_cols = w2t.shape[1]                          # fold * FeaSize (multiple of 128)

    # Tiling policy: one block for small/medium batches (no forced split on single-TC
    # v5e/v6e); for large batches an even number (>= 4) of grid steps so both v7x
    # TensorCores get a balanced, pipelined share of the "parallel" grid axis.
    if rows_total <= rows_per_tile:
        tile_rows = rows_total
        grid = (1,)
    else:
        num_tiles = pl.cdiv(rows_total, rows_per_tile)
        num_tiles = max(4, num_tiles + (num_tiles % 2))
        tile_rows = _round_up(pl.cdiv(rows_total, num_tiles), 8)
        grid = (pl.cdiv(rows_total, tile_rows),)

    out_struct = jax.ShapeDtypeStruct((rows_total, o_cols), out_dtype)
    flops = 2 * rows_total * ((nf.shape[1] + sf.shape[1]) * h_cols + h_cols * o_cols)
    bytes_accessed = (
        nf.size * nf.dtype.itemsize + sf.size * sf.dtype.itemsize
        + w1nt.size * w1nt.dtype.itemsize + w1st.size * w1st.dtype.itemsize
        + w2t.size * w2t.dtype.itemsize + b1r.size * 4 + b2r.size * 4
        + rows_total * o_cols * out_struct.dtype.itemsize
    )

    out = pl.pallas_call(
        mlp_g_kernel,
        out_shape=out_struct,
        grid_spec=pltpu.PrefetchScalarGridSpec(
            num_scalar_prefetch=0,
            grid=grid,
            in_specs=[
                pl.BlockSpec((tile_rows, nf.shape[1]), lambda i: (i, 0)),  # noise tile
                pl.BlockSpec((tile_rows, sf.shape[1]), lambda i: (i, 0)),  # sem tile
                # Constant index_map -> weights/biases stay VMEM-resident across steps.
                pl.BlockSpec(w1nt.shape, lambda i: (0, 0)),
                pl.BlockSpec(w1st.shape, lambda i: (0, 0)),
                pl.BlockSpec(b1r.shape, lambda i: (0, 0)),
                pl.BlockSpec(w2t.shape, lambda i: (0, 0)),
                pl.BlockSpec(b2r.shape, lambda i: (0, 0)),
            ],
            out_specs=pl.BlockSpec((tile_rows, o_cols), lambda i: (i, 0)),
        ),
        compiler_params=pltpu.CompilerParams(
            dimension_semantics=("parallel",),
            vmem_limit_bytes=32 * 1024 * 1024,
        ),
        cost_estimate=pl.CostEstimate(
            flops=int(flops), transcendentals=0, bytes_accessed=int(bytes_accessed)),
    )(nf, sf, w1nt, w1st, b1r, w2t, b2r)

    out = out.reshape(b_pad, fea)                  # free (row-major) unfold
    if b_pad != B:
        out = out[:B]                              # only hit when B % fold != 0
    return out


if __name__ == "__main__":
    # MLP_G(SemSize, NoiseSize, NGH, FeaSize) at small shapes.
    SemSize, NoiseSize, NGH, FeaSize = 16, 16, 32, 64
    B = 20  # deliberately NOT a multiple of 8 -> exercises the whole-array block path

    key = jax.random.PRNGKey(0)
    k_noise, k_sem, k_w1, k_w2 = jax.random.split(key, 4)

    noise = jax.random.normal(k_noise, (B, NoiseSize), dtype=jnp.float32)
    sem = jax.random.normal(k_sem, (B, SemSize), dtype=jnp.float32)

    # weights_init: Linear weights ~ N(0, 0.02), biases = 0
    w1 = 0.02 * jax.random.normal(k_w1, (NGH, NoiseSize + SemSize), dtype=jnp.float32)
    b1 = jnp.zeros((NGH,), dtype=jnp.float32)
    w2 = 0.02 * jax.random.normal(k_w2, (FeaSize, NGH), dtype=jnp.float32)
    b2 = jnp.zeros((FeaSize,), dtype=jnp.float32)

    params = prepare_mlp_g_params(w1, b1, w2, b2, NoiseSize)  # one-time layout prep
    fwd = jax.jit(functools.partial(mlp_g_forward, params=params))
    out = fwd(noise, sem)
    jax.block_until_ready(out)
    assert out.shape == (B, FeaSize)
    assert out.dtype == jnp.bfloat16

    # Reference with matching bf16 MXU operands / f32 accumulation.
    x = jnp.concatenate((noise, sem), axis=1)
    h_ref = jnp.dot(x.astype(jnp.bfloat16), w1.T.astype(jnp.bfloat16),
                    preferred_element_type=jnp.float32) + b1
    h_ref = jnp.where(h_ref > 0, h_ref, 0.2 * h_ref)
    y_ref = jnp.dot(h_ref.astype(jnp.bfloat16), w2.T.astype(jnp.bfloat16),
                    preferred_element_type=jnp.float32) + b2
    y_ref = jnp.maximum(y_ref, 0.0)
    out_f32 = out.astype(jnp.float32)
    assert jnp.allclose(out_f32, y_ref, atol=2e-3, rtol=2e-2), \
        float(jnp.max(jnp.abs(out_f32 - y_ref)))

    # Loose check against the pure-f32 PyTorch-equivalent forward (bf16 rounding only).
    h32 = x @ w1.T + b1
    h32 = jnp.where(h32 > 0, h32, 0.2 * h32)
    y32 = jnp.maximum(h32 @ w2.T + b2, 0.0)
    assert jnp.allclose(out_f32, y32, atol=2e-2, rtol=5e-2)

    print("KERNEL_OK")
</pallas_src>

<mosaic_0001>
module attributes {stable_mosaic.version = 11 : i64} {
  func.func @mlp_g_kernel(%arg0: i32, %arg1: memref<5x64xf32, #tpu.memory_space<vmem>>, %arg2: memref<5x64xf32, #tpu.memory_space<vmem>>, %arg3: memref<64x128xbf16, #tpu.memory_space<vmem>>, %arg4: memref<64x128xbf16, #tpu.memory_space<vmem>>, %arg5: memref<1x128xf32, #tpu.memory_space<vmem>>, %arg6: memref<128x256xbf16, #tpu.memory_space<vmem>>, %arg7: memref<1x256xf32, #tpu.memory_space<vmem>>, %arg8: memref<5x256xbf16, #tpu.memory_space<vmem>>) attributes {dimension_semantics = [#tpu.dimension_semantics<parallel>], iteration_bounds = array<i64: 1>, scalar_prefetch = 0 : i64, scratch_operands = 0 : i64, tpu.core_type = #tpu.core_type<tc>, window_params = [{transform_indices = @transform_0, window_bounds = array<i64: 5, 64>}, {transform_indices = @transform_1, window_bounds = array<i64: 5, 64>}, {pipeline_mode = #tpu.pipeline_mode<synchronous>, transform_indices = @transform_2, window_bounds = array<i64: 64, 128>}, {pipeline_mode = #tpu.pipeline_mode<synchronous>, transform_indices = @transform_3, window_bounds = array<i64: 64, 128>}, {pipeline_mode = #tpu.pipeline_mode<synchronous>, transform_indices = @transform_4, window_bounds = array<i64: 1, 128>}, {pipeline_mode = #tpu.pipeline_mode<synchronous>, transform_indices = @transform_5, window_bounds = array<i64: 128, 256>}, {pipeline_mode = #tpu.pipeline_mode<synchronous>, transform_indices = @transform_6, window_bounds = array<i64: 1, 256>}, {transform_indices = @transform_7, window_bounds = array<i64: 5, 256>}]} {
    %c0 = arith.constant 0 : index
    %c0_0 = arith.constant 0 : index
    %0 = vector.load %arg1[%c0, %c0_0] : memref<5x64xf32, #tpu.memory_space<vmem>>, vector<5x64xf32>
    %1 = arith.truncf %0 : vector<5x64xf32> to vector<5x64xbf16>
    %c0_1 = arith.constant 0 : index
    %c0_2 = arith.constant 0 : index
    %2 = vector.load %arg3[%c0_1, %c0_2] : memref<64x128xbf16, #tpu.memory_space<vmem>>, vector<64x128xbf16>
    %cst = arith.constant dense<0.000000e+00> : vector<5x128xf32>
    %3 = tpu.matmul %1, %2, %cst {dimension_numbers = #tpu.dot_dimension_numbers<[1], [0], [0], [1], [0, 0, 1, 1], [], []>} : vector<5x64xbf16>, vector<64x128xbf16>, vector<5x128xf32> -> vector<5x128xf32>
    %c0_3 = arith.constant 0 : index
    %c0_4 = arith.constant 0 : index
    %4 = vector.load %arg2[%c0_3, %c0_4] : memref<5x64xf32, #tpu.memory_space<vmem>>, vector<5x64xf32>
    %5 = arith.truncf %4 : vector<5x64xf32> to vector<5x64xbf16>
    %c0_5 = arith.constant 0 : index
    %c0_6 = arith.constant 0 : index
    %6 = vector.load %arg4[%c0_5, %c0_6] : memref<64x128xbf16, #tpu.memory_space<vmem>>, vector<64x128xbf16>
    %cst_7 = arith.constant dense<0.000000e+00> : vector<5x128xf32>
    %7 = tpu.matmul %5, %6, %cst_7 {dimension_numbers = #tpu.dot_dimension_numbers<[1], [0], [0], [1], [0, 0, 1, 1], [], []>} : vector<5x64xbf16>, vector<64x128xbf16>, vector<5x128xf32> -> vector<5x128xf32>
    %8 = arith.addf %3, %7 : vector<5x128xf32>
    %c0_8 = arith.constant 0 : index
    %c0_9 = arith.constant 0 : index
    %9 = vector.load %arg5[%c0_8, %c0_9] : memref<1x128xf32, #tpu.memory_space<vmem>>, vector<1x128xf32>
    %10 = vector.broadcast %9 : vector<1x128xf32> to vector<5x128xf32>
    %11 = arith.addf %8, %10 : vector<5x128xf32>
    %cst_10 = arith.constant 0.000000e+00 : f32
    %12 = vector.broadcast %cst_10 : f32 to vector<5x128xf32>
    %13 = arith.cmpf ogt, %11, %12 : vector<5x128xf32>
    %cst_11 = arith.constant 2.000000e-01 : f32
    %14 = vector.broadcast %cst_11 : f32 to vector<5x128xf32>
    %15 = arith.mulf %14, %11 : vector<5x128xf32>
    %16 = arith.select %13, %11, %15 : vector<5x128xi1>, vector<5x128xf32>
    %17 = arith.truncf %16 : vector<5x128xf32> to vector<5x128xbf16>
    %c0_12 = arith.constant 0 : index
    %c0_13 = arith.constant 0 : index
    %18 = vector.load %arg6[%c0_12, %c0_13] : memref<128x256xbf16, #tpu.memory_space<vmem>>, vector<128x256xbf16>
    %cst_14 = arith.constant dense<0.000000e+00> : vector<5x256xf32>
    %19 = tpu.matmul %17, %18, %cst_14 {dimension_numbers = #tpu.dot_dimension_numbers<[1], [0], [0], [1], [0, 0, 1, 1], [], []>} : vector<5x128xbf16>, vector<128x256xbf16>, vector<5x256xf32> -> vector<5x256xf32>
    %c0_15 = arith.constant 0 : index
    %c0_16 = arith.constant 0 : index
    %20 = vector.load %arg7[%c0_15, %c0_16] : memref<1x256xf32, #tpu.memory_space<vmem>>, vector<1x256xf32>
    %21 = vector.broadcast %20 : vector<1x256xf32> to vector<5x256xf32>
    %22 = arith.addf %19, %21 : vector<5x256xf32>
    %cst_17 = arith.constant 0.000000e+00 : f32
    %23 = vector.broadcast %cst_17 : f32 to vector<5x256xf32>
    %24 = arith.maximumf %22, %23 : vector<5x256xf32>
    %25 = arith.truncf %24 : vector<5x256xf32> to vector<5x256xbf16>
    %c0_18 = arith.constant 0 : index
    %c0_19 = arith.constant 0 : index
    %26 = vector.load %arg8[%c0_18, %c0_19] : memref<5x256xbf16, #tpu.memory_space<vmem>>, vector<5x256xbf16>
    tpu.vector_store %arg8[%c0_18, %c0_19], %25 {strides = array<i32>} : memref<5x256xbf16, #tpu.memory_space<vmem>>, vector<5x256xbf16>,
    return
  }
  func.func @transform_0(%arg0: i32) -> (i32, i32) {
    %c0_i32 = arith.constant 0 : i32
    %c0_i32_0 = arith.constant 0 : i32
    return %arg0, %c0_i32 : i32, i32
  }
  func.func @transform_1(%arg0: i32) -> (i32, i32) {
    %c0_i32 = arith.constant 0 : i32
    %c0_i32_0 = arith.constant 0 : i32
    return %arg0, %c0_i32 : i32, i32
  }
  func.func @transform_2(%arg0: i32) -> (i32, i32) {
    %c0_i32 = arith.constant 0 : i32
    %c0_i32_0 = arith.constant 0 : i32
    %c0_i32_1 = arith.constant 0 : i32
    return %c0_i32, %c0_i32_0 : i32, i32
  }
  func.func @transform_3(%arg0: i32) -> (i32, i32) {
    %c0_i32 = arith.constant 0 : i32
    %c0_i32_0 = arith.constant 0 : i32
    %c0_i32_1 = arith.constant 0 : i32
    return %c0_i32, %c0_i32_0 : i32, i32
  }
  func.func @transform_4(%arg0: i32) -> (i32, i32) {
    %c0_i32 = arith.constant 0 : i32
    %c0_i32_0 = arith.constant 0 : i32
    %c0_i32_1 = arith.constant 0 : i32
    return %c0_i32, %c0_i32_0 : i32, i32
  }
  func.func @transform_5(%arg0: i32) -> (i32, i32) {
    %c0_i32 = arith.constant 0 : i32
    %c0_i32_0 = arith.constant 0 : i32
    %c0_i32_1 = arith.constant 0 : i32
    return %c0_i32, %c0_i32_0 : i32, i32
  }
  func.func @transform_6(%arg0: i32) -> (i32, i32) {
    %c0_i32 = arith.constant 0 : i32
    %c0_i32_0 = arith.constant 0 : i32
    %c0_i32_1 = arith.constant 0 : i32
    return %c0_i32, %c0_i32_0 : i32, i32
  }
  func.func @transform_7(%arg0: i32) -> (i32, i32) {
    %c0_i32 = arith.constant 0 : i32
    %c0_i32_0 = arith.constant 0 : i32
    return %arg0, %c0_i32 : i32, i32
  }
}

</mosaic_0001>

<bundles_post_ra>
// kernel: mlp_g_forward.1
= control target key start
LH: loop header
LB: loop body
LE: loop exit
PB: predicated region body
PF: predicated region fallthrough
CT: control target
= control target key end

     0   :  { %v465_v0 = vmov 0.0   ;;  %vm466_vm0 = vmmov 0   ;;  %vm71_vm1 = vcmask 523264   ;;  %v467_v29 = vmov 0   ;;  %s602_s3 = inlined_call_operand.vmem [shape: bf16[64,128], index: 3, kind: input, shape index: {}]   ;;  %s603_s2 = inlined_call_operand.vmem [shape: bf16[64,128], index: 2, kind: input, shape index: {}]   ;;  %s604_s1 = inlined_call_operand.vmem [shape: f32[5,64], index: 1, kind: input, shape index: {}]   ;;  %s605_s5 = inlined_call_operand.vmem [shape: bf16[128,256], index: 5, kind: input, shape index: {}]   ;;  %s606_s0 = inlined_call_operand.vmem [shape: f32[5,64], index: 0, kind: input, shape index: {}]   ;;  %s607_s4 = inlined_call_operand.vmem [shape: f32[1,128], index: 4, kind: input, shape index: {}]   ;;  %s608_s6 = inlined_call_operand.vmem [shape: f32[1,256], index: 6, kind: input, shape index: {}]   ;;  %s609_s7 = inlined_call_operand.vmem [shape: bf16[5,256], index: 7, kind: output, shape index: {}]  }
   0x1   :  { %406 = vmatprep.subr.bf16.mxu1 %v465_v0  ;;  %v433_v1 = vld [vmem:[%s602_s3] sm:$0xff]   ;;  %414 = vmatprep.mubr.msk.bf16.mxu1 %vm466_vm0, %v465_v0  ;;  %v434_v2 = vld [vmem:[%s602_s3 + $0x8] sm:$0xff]   ;;  %v435_v3 = vld [vmem:[%s602_s3 + $0x10] sm:$0xff]   ;;  %v212_v44 = vlaneseq  ;;  %vm353_vm3 = vcmask 1042432   ;;  %vm354_vm4 = vsmask.f32 2304 }
   0x2   :  { %407 = vmatpush3.bf16.msra.mxu1 %v433_v1  ;;  %v436_v4 = vld [vmem:[%s602_s3 + $0x18] sm:$0xff]   ;;  %v37_v5 = vld [vmem:[%s604_s1] sm:$0x1f]  ;;  %v438_v12 = vld [vmem:[%s603_s2 + $0x8] sm:$0xff]   ;;  %334 = vmatprep.mubr.bf16.mxu0 %v467_v29  ;;  %vm356_vm5 = vcmask 1046532  }
   0x3   :  { %408 = vmatprep.subr.bf16.mxu1 %v465_v0  ;;  %v441_v6 = vld [vmem:[%s605_s5 + $0x4] ss:$8 sps:$4 sm:$0xff]   ;;  %v443_v7 = vld [vmem:[%s605_s5] ss:$8 sps:$4 sm:$0xff]   ;;  %v444_v8 = vld [vmem:[%s605_s5 + $0x14] ss:$8 sps:$4 sm:$0xff]   ;;  %v38_v11 = vpack.c.bf16 %v37_v5, %v37_v5 }
   0x4   :  { %302 = vmatprep.subr.bf16.mxu0 %v441_v6  ;;  %v446_v9 = vld [vmem:[%s605_s5 + $0x10] ss:$8 sps:$4 sm:$0xff]   ;;  %v437_v10 = vld [vmem:[%s603_s2] sm:$0xff]   ;;  %v450_v19 = vld [vmem:[%s605_s5 + $0x34] ss:$8 sps:$4 sm:$0xff]   ;;  %v213_v45 = vshrl.u32 %v212_v44, 7 }
   0x5   :  { %303 = vmatpush1.bf16.msra.mxu0 %v443_v7  ;;  %v439_v13 = vld [vmem:[%s603_s2 + $0x10] sm:$0xff]   ;;  %v440_v14 = vld [vmem:[%s603_s2 + $0x18] sm:$0xff]   ;;  %v27_v15 = vld [vmem:[%s606_s0] sm:$0x1f]  ;;  %vm357_vm6 = vsmask.f32 6400 }
   0x6   :  { %409 = vmatpush3.bf16.msra.mxu1 %v434_v2  ;;  %304 = vmatprep.subr.bf16.mxu0 %v444_v8  ;;  %v28_v16 = vpack.c.bf16 %v27_v15, %v27_v15  ;;  %v447_v17 = vld [vmem:[%s605_s5 + $0x24] ss:$8 sps:$4 sm:$0xff]   ;;  %v449_v18 = vld [vmem:[%s605_s5 + $0x20] ss:$8 sps:$4 sm:$0xff]   ;;  %v452_v20 = vld [vmem:[%s605_s5 + $0x30] ss:$8 sps:$4 sm:$0xff]  }
   0x7   :  { %410 = vmatprep.subr.bf16.mxu1 %v465_v0  ;;  %v453_v21 = vld [vmem:[%s605_s5 + $0x44] ss:$8 sps:$4 sm:$0xff]   ;;  %v455_v22 = vld [vmem:[%s605_s5 + $0x40] ss:$8 sps:$4 sm:$0xff]   ;;  %v456_v23 = vld [vmem:[%s605_s5 + $0x54] ss:$8 sps:$4 sm:$0xff]  }
   0x8   :  { %v458_v24 = vld [vmem:[%s605_s5 + $0x50] ss:$8 sps:$4 sm:$0xff]   ;;  %v459_v25 = vld [vmem:[%s605_s5 + $0x64] ss:$8 sps:$4 sm:$0xff]   ;;  %v461_v26 = vld [vmem:[%s605_s5 + $0x60] ss:$8 sps:$4 sm:$0xff]  }
   0x9   :  { %305 = vmatpush1.bf16.msra.mxu0 %v446_v9  ;;  %v462_v27 = vld [vmem:[%s605_s5 + $0x74] ss:$8 sps:$4 sm:$0xff]   ;;  %v464_v28 = vld [vmem:[%s605_s5 + $0x70] ss:$8 sps:$4 sm:$0xff]   ;;  %v377_v35 = vld [vmem:[%s607_s4] ss:$0 sm:$0xff] }
   0xa   :  { %411 = vmatpush3.bf16.msra.mxu1 %v435_v3  ;;  %306 = vmatprep.subr.bf16.mxu0 %v447_v17  ;;  %v214_v46 = vsub.s32 0, %v213_v45  ;;  %v210_v47 = vld [vmem:[%s608_s6] sm:$0x3]  ;;  %v218_v48 = vsub.s32 1, %v213_v45  ;;  %vm355_vm7 = vmand %vm353_vm3, %vm354_vm4 }
   0xb   :  { %412 = vmatprep.subr.bf16.mxu1 %v465_v0  ;;  %vm358_vm8 = vmand %vm356_vm5, %vm357_vm6  ;;  %v360_v59 = vld [vmem:[%s609_s7] sm:$0x77] }
   0xc   :  { %v215_v49 = vrot.slane %v210_v47, %v214_v46  ;;  %v219_v50 = vrot.slane %v210_v47, %v218_v48  ;;  %vm359_vm9 = vmor %vm358_vm8, %vm355_vm7 }
   0xd   :  { %307 = vmatpush1.bf16.msra.mxu0 %v449_v18 }
   0xe   :  { %413 = vmatpush3.bf16.msra.mxu1 %v436_v4  ;;  %308 = vmatprep.subr.bf16.mxu0 %v450_v19 }
   0xf   :  { %418 = vmatprep.subr.bf16.mxu1 %v465_v0 }
  0x11   :  { %415 = vmatmul.mubr.msk.bf16.vlgmr.msra.gmra.mrb[0].mxu1 %vm71_vm1, %v38_v11  ;;  %309 = vmatpush1.bf16.msra.mxu0 %v452_v20 }
  0x12   :  { %419 = vmatpush3.bf16.msra.mxu1 %v437_v10  ;;  %426 = vmatprep.mubr.msk.bf16.mxu1 %vm466_vm0, %v465_v0 }
  0x13   :  { %420 = vmatprep.subr.bf16.mxu1 %v465_v0  ;;  %310 = vmatprep.subr.bf16.mxu0 %v453_v21 }
  0x15   :  { %311 = vmatpush1.bf16.msra.mxu0 %v455_v22 }
  0x16   :  { %421 = vmatpush3.bf16.msra.mxu1 %v438_v12  ;;  %312 = vmatprep.subr.bf16.mxu0 %v456_v23 }
  0x17   :  { %422 = vmatprep.subr.bf16.mxu1 %v465_v0 }
  0x19   :  { %313 = vmatpush1.bf16.msra.mxu0 %v458_v24 }
  0x1a   :  { %423 = vmatpush3.bf16.msra.mxu1 %v439_v13  ;;  %314 = vmatprep.subr.bf16.mxu0 %v459_v25 }
  0x1b   :  { %424 = vmatprep.subr.bf16.mxu1 %v465_v0 }
  0x1d   :  { %315 = vmatpush1.bf16.msra.mxu0 %v461_v26 }
  0x1e   :  { %425 = vmatpush3.bf16.msra.mxu1 %v440_v14  ;;  %316 = vmatprep.subr.bf16.mxu0 %v462_v27 }
  0x21   :  { %427 = vmatmul.mubr.msk.bf16.vlgmr.msra.gmra.mrb[4].mxu1 %vm71_vm1, %v28_v16  ;;  %317 = vmatpush1.bf16.msra.mxu0 %v464_v28 }
  0xe4   :  { %v109_v30 = vpop.f32.mrb[0].mxu1 }
  0xe5   :  { %v416_v31 = vpop.f32.mrb[1].mxu1 }
  0xe6   :  { %v112_v32 = vpop.f32.mrb[2].mxu1 }
  0xe7   :  { %v417_v33 = vpop.f32.mrb[3].mxu1 }
  0xf4   :  { %v176_v34 = vpop.f32.mrb[4].mxu1 }
  0xf5   :  { %v177_v36 = vadd.f32 %v176_v34, %v109_v30  ;;  %v428_v37 = vpop.f32.mrb[5].mxu1 }
  0xf6   :  { %v179_v38 = vpop.f32.mrb[6].mxu1 }
  0xf7   :  { %v189_v39 = vadd.f32 %v377_v35, %v177_v36  ;;  %v429_v40 = vpop.f32.mrb[7].mxu1 }
  0xf9   :  { %v191_v41 = vmul.f32 0.2, %v189_v39  ;;  %vm190_vm2 = vcmp.gt.f32.partialorder %v189_v39, 0.0 }
  0xfb   :  { %v192_v42 = vsel %vm190_vm2, %v189_v39, %v191_v41 }
  0xfc   :  { %v193_v43 = vpack.c.bf16 %v192_v42, %v192_v42 }
  0xfe   :  { %335 = vmatmul.mubr.bf16.vlgmr.msra.gmra.mrb[0].mxu0 %v193_v43 }
 0x1d1   :  { %v336_v51 = vpop.f32.mrb[0].mxu0 }
 0x1d2   :  { %v337_v52 = vadd.f32 %v336_v51, %v215_v49  ;;  %v338_v53 = vpop.f32.mrb[1].mxu0 }
 0x1d3   :  { %v339_v54 = vadd.f32 %v338_v53, %v219_v50  ;;  %v340_v55 = vpop.f32.mrb[2].mxu0 }
 0x1d4   :  { %v343_v56 = vmax.f32 %v337_v52, 0.0  ;;  %v341_v57 = vpop.f32.mrb[3].mxu0 }
 0x1d5   :  { %v344_v58 = vmax.f32 %v339_v54, 0.0 }
 0x1d7   :  { %v395_v60 = vpack.c.bf16 %v344_v58, %v343_v56 }
 0x1d9   :  { %v361_v61 = vsel %vm359_vm9, %v395_v60, %v360_v59 }
 0x1da   :  { %362 = vst [vmem:[%s609_s7] sm:$0x77] %v361_v61 }

</bundles_post_ra>
